<compile_context>
chip_gen: v5e
topology: v5e:2x2
jax: 0.10.0
libtpu: 0.0.40
codegen_flags: <defaults>
</compile_context>

<pallas_src>
import functools

import jax
import jax.numpy as jnp
from jax import lax
from jax.experimental import pallas as pl
from jax.experimental.pallas import tpu as pltpu


def _sublane_tile(dtype):
    """Second-minor VMEM tile size for a dtype (8 f32 / 16 bf16 / 32 int8)."""
    return max(8, 32 // jnp.dtype(dtype).itemsize)


def _round_up(x, m):
    return (x + m - 1) // m * m


def _pick_chunk(tl):
    """Largest lane chunk in [128, 2048] that divides the (128-multiple) tile."""
    for c in (2048, 1024, 512, 256, 128):
        if tl % c == 0:
            return c
    return tl


def _conv1x1_vpu_kernel(x_ref, w_ref, o_ref, *, chunk):
    """Tiny-channel path: unrolled broadcast FMAs on the VPU.

    Streams the lane tile in `chunk`-lane slices so vreg pressure stays bounded
    even for very large lane tiles (the kernel is HBM-bound; the VPU has slack).

    x_ref: (1, Cin, TL) VMEM   w_ref: (Cout, Cin) VMEM   o_ref: (1, Cout, TL) VMEM
    """
    cin = x_ref.shape[1]
    tl = x_ref.shape[2]
    n_chunks = tl // chunk
    # Weight read hoisted out of the chunk loop; its (8,128)-padded VMEM block is
    # a few KiB, so an SMEM placement buys nothing measurable for this kernel.
    w = w_ref[...].astype(jnp.float32)                                # (Cout, Cin)

    def body(c, carry):
        off = pl.multiple_of(c * chunk, 128)
        x_c = x_ref[0, :, pl.ds(off, chunk)].astype(jnp.float32)      # (Cin, chunk)
        acc = w[:, 0:1] * x_c[0:1, :]                                 # (Cout, chunk)
        for ci in range(1, cin):
            acc = acc + w[:, ci:ci + 1] * x_c[ci:ci + 1, :]
        o_ref[0, :, pl.ds(off, chunk)] = acc.astype(o_ref.dtype)
        return carry

    lax.fori_loop(0, n_chunks, body, 0, unroll=n_chunks <= 8)


def _conv1x1_mxu_kernel(x_ref, w_ref, o_ref, *, chunk):
    """Large-channel path: MXU matmul with the spatial tile on the lane axis."""
    tl = x_ref.shape[2]
    n_chunks = tl // chunk

    def body(c, carry):
        off = pl.multiple_of(c * chunk, 128)
        o_ref[0, :, pl.ds(off, chunk)] = jnp.dot(
            w_ref[...], x_ref[0, :, pl.ds(off, chunk)],
            preferred_element_type=jnp.float32).astype(o_ref.dtype)
        return carry

    lax.fori_loop(0, n_chunks, body, 0, unroll=n_chunks <= 4)


def conv1x1_nchw_pallas(x_flat, w_mat, *, lane_tile_cap=128 * 1024):
    """1x1 conv in NCHW layout.

    x_flat: (N, Cin, L) with L = H*W (spatial on the lane axis).
    w_mat:  (Cout, Cin).
    Returns (N, Cout, L).
    """
    N, Cin, L = x_flat.shape
    Cout = w_mat.shape[0]
    itemsize = jnp.dtype(x_flat.dtype).itemsize
    sub = _sublane_tile(x_flat.dtype)

    # --- VMEM budget: padding- and generation-aware. Blocks of (1, C, TL) pad C
    # up to the sublane tile; the weight block pads to (sub, 128) granules.
    try:
        vmem_cap = int(pltpu.get_tpu_info().vmem_capacity_bytes)
    except Exception:  # conservative fallback = v7x per-core capacity
        vmem_cap = 64 * 1024 * 1024
    budget = vmem_cap // 2

    cin_pad = _round_up(Cin, sub)
    cout_pad = _round_up(Cout, sub)
    w_itemsize = jnp.dtype(w_mat.dtype).itemsize
    w_bytes = 2 * _round_up(Cout, _sublane_tile(w_mat.dtype)) * _round_up(Cin, 128) * w_itemsize
    bytes_per_lane = 2 * (cin_pad + cout_pad) * itemsize   # double-buffered in + out

    cap = max(128, ((budget - w_bytes) // bytes_per_lane) // 128 * 128)
    TL = min(lane_tile_cap, cap, _round_up(L, 128))

    # v7x megacore: make sure there are at least a few 'parallel' grid steps so
    # both TensorCores get work (no-op cost on single-TC v5e/v6e).
    min_steps = 4
    if N * pl.cdiv(L, TL) < min_steps and TL > 128:
        tiles_wanted = pl.cdiv(min_steps, N)
        TL = max(128, min(TL, _round_up(pl.cdiv(L, tiles_wanted), 128)))

    num_tiles = pl.cdiv(L, TL)   # boundary block is clipped; no wrapper pad/slice
    chunk = _pick_chunk(TL)
    grid = (N, num_tiles)

    kernel = _conv1x1_mxu_kernel if Cin >= 128 else _conv1x1_vpu_kernel
    kernel = functools.partial(kernel, chunk=chunk)

    est_vmem = (cin_pad + cout_pad) * TL * itemsize * 2 + w_bytes
    vmem_limit = int(min(3 * vmem_cap // 4, max(2 * est_vmem, 16 * 1024 * 1024)))

    y = pl.pallas_call(
        kernel,
        out_shape=jax.ShapeDtypeStruct((N, Cout, L), x_flat.dtype),
        grid_spec=pltpu.PrefetchScalarGridSpec(
            num_scalar_prefetch=0,
            grid=grid,
            in_specs=[
                pl.BlockSpec((1, Cin, TL), lambda n, t: (n, 0, t)),
                pl.BlockSpec((Cout, Cin), lambda n, t: (0, 0)),   # weight stays resident
            ],
            out_specs=pl.BlockSpec((1, Cout, TL), lambda n, t: (n, 0, t)),
        ),
        compiler_params=pltpu.CompilerParams(
            dimension_semantics=("parallel", "parallel"),
            vmem_limit_bytes=vmem_limit,
        ),
    )(x_flat, w_mat)
    return y


def dupsampling_forward(x_nchw, conv_weight, scale):
    """Replicates DUpsampling.forward.

    x_nchw:      (N, Cin, H, W)
    conv_weight: (Cout, Cin, 1, 1) with Cout = num_class * scale * scale (no bias)
    returns:     (N, num_class, H*scale, W*scale)
    """
    N, Cin, H, W = x_nchw.shape
    Cout = conv_weight.shape[0]
    num_class = Cout // (scale * scale)

    w_mat = conv_weight.reshape(Cout, Cin).astype(x_nchw.dtype)
    x_flat = x_nchw.reshape(N, Cin, H * W)            # free reshape, stays NCHW
    y = conv1x1_nchw_pallas(x_flat, w_mat)            # (N, Cout, H*W)
    y = y.reshape(N, Cout, H, W)                      # free reshape

    # Pixel shuffle collapsed into ONE transpose (single fused XLA copy).
    # Conv channel c decomposes as c = (a*scale + a2)*num_class + k where
    # `a` is the W offset and `a2` the H offset:
    #   out[n, k, h*scale + a2, w*scale + a] = y[n, c, h, w]
    y6 = y.reshape(N, scale, scale, num_class, H, W)  # (n, a, a2, k, h, w) - free
    out = jnp.transpose(y6, (0, 3, 4, 2, 5, 1))       # (n, k, h, a2, w, a)
    return out.reshape(N, num_class, H * scale, W * scale)   # free merge


if __name__ == "__main__":
    # Module config: inplanes=4, scale=2, num_class=1 -> Cout = 1*2*2 = 4
    inplanes, scale, num_class = 4, 2, 1
    cout = num_class * scale * scale
    N, H, W = 2, 16, 16

    key = jax.random.PRNGKey(0)
    kx, kw = jax.random.split(key)
    x = jax.random.normal(kx, (N, inplanes, H, W), dtype=jnp.float32)
    conv_w = jax.random.normal(kw, (cout, inplanes, 1, 1), dtype=jnp.float32) * 0.1

    out = jax.block_until_ready(dupsampling_forward(x, conv_w, scale))

    # Reference: exact replication of the PyTorch forward (conv + view/permute chain).
    ref_conv = jnp.einsum("nchw,oc->nohw", x, conv_w.reshape(cout, inplanes))
    r = jnp.transpose(ref_conv, (0, 2, 3, 1))
    r = r.reshape(N, H, W * scale, cout // scale)
    r = jnp.transpose(r, (0, 2, 1, 3))
    r = r.reshape(N, W * scale, H * scale, cout // (scale * scale))
    r = jnp.transpose(r, (0, 3, 2, 1))

    assert out.shape == (N, num_class, H * scale, W * scale), out.shape
    assert jnp.allclose(out, r, atol=1e-5, rtol=1e-5), float(jnp.max(jnp.abs(out - r)))

    print("KERNEL_OK")
</pallas_src>

<mosaic_0001>
module attributes {stable_mosaic.version = 11 : i64} {
  func.func @_conv1x1_vpu_kernel(%arg0: i32, %arg1: i32, %arg2: memref<1x4x128xf32, #tpu.memory_space<vmem>>, %arg3: memref<4x4xf32, #tpu.memory_space<vmem>>, %arg4: memref<1x4x128xf32, #tpu.memory_space<vmem>>) attributes {dimension_semantics = [#tpu.dimension_semantics<parallel>, #tpu.dimension_semantics<parallel>], iteration_bounds = array<i64: 2, 2>, scalar_prefetch = 0 : i64, scratch_operands = 0 : i64, tpu.core_type = #tpu.core_type<tc>, window_params = [{transform_indices = @transform_0, window_bounds = array<i64: 1, 4, 128>}, {pipeline_mode = #tpu.pipeline_mode<synchronous>, transform_indices = @transform_1, window_bounds = array<i64: 4, 4>}, {transform_indices = @transform_2, window_bounds = array<i64: 1, 4, 128>}]} {
    %c0 = arith.constant 0 : index
    %c0_0 = arith.constant 0 : index
    %0 = vector.load %arg3[%c0, %c0_0] : memref<4x4xf32, #tpu.memory_space<vmem>>, vector<4x4xf32>
    %c0_i32 = arith.constant 0 : i32
    %c128_i32 = arith.constant 128 : i32
    %1 = arith.muli %c0_i32, %c128_i32 : i32
    %2 = tpu.assume_multiple %1, 128 : i32
    %c0_1 = arith.constant 0 : index
    %c0_2 = arith.constant 0 : index
    %3 = arith.index_cast %2 : i32 to index
    %4 = vector.load %arg2[%c0_1, %c0_2, %3] : memref<1x4x128xf32, #tpu.memory_space<vmem>>, vector<1x4x128xf32>
    %5 = vector.shape_cast %4 : vector<1x4x128xf32> to vector<4x128xf32>
    %6 = vector.extract_strided_slice %0 {offsets = [0, 0], sizes = [4, 1], strides = [1, 1]} : vector<4x4xf32> to vector<4x1xf32>
    %7 = vector.extract_strided_slice %5 {offsets = [0, 0], sizes = [1, 128], strides = [1, 1]} : vector<4x128xf32> to vector<1x128xf32>
    %8 = vector.broadcast %6 : vector<4x1xf32> to vector<4x128xf32>
    %9 = vector.broadcast %7 : vector<1x128xf32> to vector<4x128xf32>
    %10 = arith.mulf %8, %9 : vector<4x128xf32>
    %11 = vector.extract_strided_slice %0 {offsets = [0, 1], sizes = [4, 1], strides = [1, 1]} : vector<4x4xf32> to vector<4x1xf32>
    %12 = vector.extract_strided_slice %5 {offsets = [1, 0], sizes = [1, 128], strides = [1, 1]} : vector<4x128xf32> to vector<1x128xf32>
    %13 = vector.broadcast %11 : vector<4x1xf32> to vector<4x128xf32>
    %14 = vector.broadcast %12 : vector<1x128xf32> to vector<4x128xf32>
    %15 = arith.mulf %13, %14 : vector<4x128xf32>
    %16 = arith.addf %10, %15 : vector<4x128xf32>
    %17 = vector.extract_strided_slice %0 {offsets = [0, 2], sizes = [4, 1], strides = [1, 1]} : vector<4x4xf32> to vector<4x1xf32>
    %18 = vector.extract_strided_slice %5 {offsets = [2, 0], sizes = [1, 128], strides = [1, 1]} : vector<4x128xf32> to vector<1x128xf32>
    %19 = vector.broadcast %17 : vector<4x1xf32> to vector<4x128xf32>
    %20 = vector.broadcast %18 : vector<1x128xf32> to vector<4x128xf32>
    %21 = arith.mulf %19, %20 : vector<4x128xf32>
    %22 = arith.addf %16, %21 : vector<4x128xf32>
    %23 = vector.extract_strided_slice %0 {offsets = [0, 3], sizes = [4, 1], strides = [1, 1]} : vector<4x4xf32> to vector<4x1xf32>
    %24 = vector.extract_strided_slice %5 {offsets = [3, 0], sizes = [1, 128], strides = [1, 1]} : vector<4x128xf32> to vector<1x128xf32>
    %25 = vector.broadcast %23 : vector<4x1xf32> to vector<4x128xf32>
    %26 = vector.broadcast %24 : vector<1x128xf32> to vector<4x128xf32>
    %27 = arith.mulf %25, %26 : vector<4x128xf32>
    %28 = arith.addf %22, %27 : vector<4x128xf32>
    %c0_3 = arith.constant 0 : index
    %c0_4 = arith.constant 0 : index
    %29 = arith.index_cast %2 : i32 to index
    %30 = vector.load %arg4[%c0_3, %c0_4, %29] : memref<1x4x128xf32, #tpu.memory_space<vmem>>, vector<1x4x128xf32>
    %31 = vector.shape_cast %30 : vector<1x4x128xf32> to vector<4x128xf32>
    %32 = vector.shape_cast %28 : vector<4x128xf32> to vector<1x4x128xf32>
    tpu.vector_store %arg4[%c0_3, %c0_4, %29], %32 {strides = array<i32>} : memref<1x4x128xf32, #tpu.memory_space<vmem>>, vector<1x4x128xf32>,
    %c1_i32 = arith.constant 1 : i32
    return
  }
  func.func @transform_0(%arg0: i32, %arg1: i32) -> (i32, i32, i32) {
    %c0_i32 = arith.constant 0 : i32
    %c0_i32_0 = arith.constant 0 : i32
    return %arg0, %c0_i32, %arg1 : i32, i32, i32
  }
  func.func @transform_1(%arg0: i32, %arg1: i32) -> (i32, i32) {
    %c0_i32 = arith.constant 0 : i32
    %c0_i32_0 = arith.constant 0 : i32
    %c0_i32_1 = arith.constant 0 : i32
    return %c0_i32, %c0_i32_0 : i32, i32
  }
  func.func @transform_2(%arg0: i32, %arg1: i32) -> (i32, i32, i32) {
    %c0_i32 = arith.constant 0 : i32
    %c0_i32_0 = arith.constant 0 : i32
    return %arg0, %c0_i32, %arg1 : i32, i32, i32
  }
}

</mosaic_0001>

<bundles_post_ra>
// kernel: tpu_custom_call.1
= control target key start
LH: loop header
LB: loop body
LE: loop exit
PB: predicated region body
PF: predicated region fallthrough
CT: control target
= control target key end

     0   :  { %s814_s0 = inlined_call_operand.hbm [shape: f32[2,4,256], index: 0, kind: input, shape index: {}]   ;;  %s815_s1 = inlined_call_operand.hbm [shape: f32[4,4], index: 1, kind: input, shape index: {}]   ;;  %s816_s2 = inlined_call_operand.hbm [shape: f32[2,4,256], index: 2, kind: output, shape index: {}]  }
   0x1   :  { %821 = sst [smem:[#allocation15_spill]] %s815_s1 }
   0x2   :  { %7 = vsyncpa [#allocation3], 0 }
   0x3   :  { %9 = vsyncpa [#allocation3 + $0x1], 0 }
   0x4   :  { %10 = vsyncpa [#allocation6], 0 }
   0x5   :  { %11 = vsyncpa [#allocation4], 0 }
   0x6   :  { %13 = vsyncpa [#allocation4 + $0x1], 0  ;;  %s637_s9 = smov 0   ;;  %s639_s10 = smov 0  }
   0x7   :  { %s641_s11 = smov 0   ;;  %s643_s12 = smov 0  }
   0x8   :  { %s645_s13 = smov 0   ;;  %s647_s14 = smov 0  }
   0x9   :  { %s649_s15 = smov 0   ;;  %s651_s16 = smov 0  }
   0xa LB: > { %822 = sst [smem:[#allocation11_spill]] %s587_s9  ;;  %s338_s17 = sadd.s32 4294967295, %s615_s16   ;;  %s615_s16 = sphi %s651_s16, %s19_s16   ;;  %s611_s15 = sphi %s649_s15, %s844_s15   ;;  %s607_s14 = sphi %s647_s14, %s843_s14   ;;  %s603_s13 = sphi %s645_s13, %s842_s13   ;;  %s599_s12 = sphi %s643_s12, %s841_s12   ;;  %s595_s11 = sphi %s641_s11, %s840_s11   ;;  %s591_s10 = sphi %s639_s10, %s839_s10   ;;  %s587_s9 = sphi %s637_s9, %s838_s9  }
   0xb   : > { %s339_s18 = sadd.s32 4294967294, %s615_s16   ;;  %p53_p0 = scmp.ne.s32.totalorder %s591_s10, %s587_s9 }
   0xc   : > { %p681_p1 = scmp.eq.s32.totalorder %s338_s17, 0  ;;  %p685_p2 = scmp.eq.s32.totalorder %s338_s17, 3 }
   0xd   : > { %p106_p3 = scmp.eq.s32.totalorder %s339_s18, 3  ;;  %p340_p5 = scmp.ge.s32.totalorder %s615_s16, 1 }
   0xe   : > { %p691_p4 = por %p681_p1, %p53_p0  ;;  %p113_p7 = scmp.lt.s32.totalorder %s615_s16, 5 }
   0xf   : > { %p696_p6 = por %p106_p3, %p53_p0  ;;  %s828_s1 = sld [smem:[#allocation15_spill]] }
  0x10   : > { %p704_p8 = pnand %p340_p5, %p113_p7  ;;  %s617_s27 = smov [#allocation5]  }
  0x11   : > { %s826_s22 = scalar_select %p696_p6, 1, 0 }
  0x12   : > { %p363_p9 = pneg %p704_p8  ;;  %s127_s28 = sshll.u32 %s617_s27, 4  ;;  %s128_s28 = int_to_ptr.vmem [resolvable:$true] %s127_s28 }
  0x13   : > { %827 = sst [smem:[#allocation12_spill]] %s826_s22  ;;  %s28_s29 = sadd.s32 1, %s607_s14 }
  0x14   : > { %p364_p10 = pnand %p363_p9, %p681_p1  ;;  %p29_p11 = scmp.ge.s32.totalorder %s28_s29, 2 }
  0x15   : > { %s125_s25 = sshll.u32 %s828_s1, 4  ;;  %s31_s30 = sadd.s32 1, %s611_s15  ;;  %s126_s25 = int_to_ptr.hbm [resolvable:$true] %s125_s25 }
  0x16   : > { %366 = dma.hbm_to_vmem [thread:$0]  (!%p364_p10), %s126_s25, 64, %s128_s28, [#allocation6]  }
  0x17   : > { %s40_s3 = sadd.s32 1, %s595_s11  ;;  %p47_p12 = scmp.ne.s32.totalorder %s595_s11, %s591_s10 }
  0x18   : > { %s846_s29 = smov (%p29_p11, %s28_s29), 0  ;;  %s848_s30 = smov (!%p29_p11, %s31_s30), %s611_s15 }
  0x19   : > { %830 = sst [smem:[#allocation13_spill]] %s846_s29  ;;  %s36_s4 = ssub.s32 %s607_s14, %s846_s29 }
  0x1a   : > { %p48_p13 = scmp.eq.s32.totalorder %s615_s16, 0  ;;  %p33_p0 = scmp.ge.s32.totalorder %s848_s30, 2 }
  0x1b   : > { %p725_p3 = por %p685_p2, %p47_p12  ;;  %p376_p7 = scmp.lt.s32.totalorder %s615_s16, 4 }
  0x1c   : > { %p729_p5 = por %p48_p13, %p47_p12  ;;  %s850_s30 = smov (%p33_p0, %s848_s30), 0 }
  0x1d   : > { %833 = sst [smem:[#allocation14_spill]] %s850_s30  ;;  %s138_s7 = sand.u32 1, %s595_s11  }
  0x1e   : > { %s344_s8 = sshll.u32 %s611_s15, 1  ;;  %s35_s17 = ssub.s32 %s611_s15, %s850_s30 }
  0x1f   : > { %s37_s18 = sor.u32 %s36_s4, %s35_s17  ;;  %s343_s23 = sshll.u32 %s138_s7, 2 }
  0x20   : > { %p38_p9 = scmp.eq.s32.totalorder %s37_s18, 0  ;;  %s146_s20 = sadd.s32 %s607_s14, %s344_s8 }
  0x21   : > { %s142_s24 = scalar_lea.vmem [#allocation2], %s343_s23  ;;  %s345_s28 = sshll.u32 %s146_s20, 2 }
  0x22   : > { %s152_s25 = sshll.u32 %s142_s24, 4  ;;  %s148_s22 = scalar_lea.hbm %s814_s0, %s345_s28  ;;  %s153_s25 = int_to_ptr.vmem [resolvable:$true] %s152_s25 }
  0x23   : > { %s742_s27 = scalar_select %p38_p9, %s595_s11, %s40_s3  }
  0x24   : > { %p368_p2 = pnand %p376_p7, %p729_p5  ;;  %s150_s9 = sshll.u32 %s148_s22, 4  ;;  %s151_s9 = int_to_ptr.hbm [resolvable:$true] %s150_s9 }
  0x25   : > { %s139_s30 = scalar_lea.sflag [#allocation3], %s138_s7  ;;  %161 = sbr.rel (%p704_p8) target bundleno = 182 (0xb6), region = 28 }
  0x26   : > { %370 = dma.hbm_to_vmem [thread:$0]  (!%p368_p2), %s151_s9, 64, %s153_s25, %s139_s30  }
  0x27   : > { %s754_s3 = sand.u32 (!%p704_p8), 1, %s591_s10  }
  0x28   : > { %s347_s4 = sshll.u32 (!%p704_p8), %s754_s3, 2  ;;  %s164_s1 = scalar_lea.sflag (!%p704_p8), [#allocation3], %s754_s3 }
  0x29   : > { %s167_s29 = scalar_lea.vmem (!%p704_p8), [#allocation2], %s347_s4 }
  0x2a   : > { %574 = dma.done.wait (%p691_p4), %s164_s1, 64  }
  0x2b   : > { %576 = vsyncadd (%p691_p4), %s164_s1, 4294967232 }
  0x2c   : > { %578 = dma.done.wait (%p681_p1), [#allocation6], 64  }
  0x2d   : > { %580 = vsyncadd (%p681_p1), [#allocation6], 4294967232  ;;  %v618_v0 = vmov 0   ;;  %v619_v1 = vmov 2   ;;  %v194_v2 = vld [vmem:[#allocation5] sm:$0xf] }
  0x2e   : > { %448 = vset.pattern.permute.xlu0 %v618_v0  ;;  %450 = vset.pattern.permute.xlu1 %v619_v1  ;;  %v620_v3 = vmov 1   ;;  %v621_v4 = vmov 3   ;;  %s351_s9 = sshll.u32 %s603_s13, 1  ;;  %v195_v7 = vld [vmem:[%s167_s29] sm:$0xf]  ;;  %s226_s7 = scalar_lea.sflag [#allocation4], %s754_s3 }
  0x2f   : > { %198 = vperm.xlu0 %448, %v194_v2   ;;  %211 = vperm.xlu1 %450, %v194_v2   ;;  %s236_s19 = sadd.s32 %s599_s12, %s351_s9  ;;  %v201_v8 = vperm.slane %v195_v7, 0  ;;  %v207_v9 = vperm.slane %v195_v7, 1  ;;  %v214_v10 = vperm.slane %v195_v7, 2  ;;  %v221_v11 = vperm.slane %v195_v7, 3  ;;  %s193_s12 = scalar_lea.vmem [#allocation7], %s347_s4 }
  0x30   : > { %s352_s21 = sshll.u32 %s236_s19, 2  ;;  %s240_s13 = sshll.u32 %s193_s12, 4  ;;  %s241_s13 = int_to_ptr.vmem [resolvable:$true] %s240_s13 }
  0x31   : > { %s238_s30 = scalar_lea.hbm %s816_s2, %s352_s21  ;;  %s533_s20 = scalar_lea.hbm %s816_s2, 16 }
  0x32   : > { %s242_s6 = sshll.u32 %s238_s30, 4  ;;  %s243_s6 = int_to_ptr.hbm [resolvable:$true] %s242_s6 }
  0x33   : > { %s527_s8 = sshra.s32 %s243_s6, 4  ;;  %s528_s8 = int_to_ptr.hbm [resolvable:$true] %s527_s8 }
  0x34   : > { %s529_s17 = scalar_lea.hbm %s528_s8, 4  ;;  %p534_p10 = scmp.lt.s32.totalorder %s528_s8, %s816_s2 }
  0x35   : > { %p530_p1 = scmp.ne.s32.totalorder %s528_s8, %s529_s17  ;;  %p535_p11 = scmp.lt.s32.totalorder %s533_s20, %s529_s17 }
  0x37   : > { %449 = vset.pattern.permute.xlu0 %v620_v3  ;;  %451 = vset.pattern.permute.xlu1 %v621_v4  ;;  %p531_p4 = pnand %p530_p1, %p725_p3  ;;  %p536_p12 = por %p535_p11, %p534_p10 }
  0x38   : > { %204 = vperm.xlu0 %449, %v194_v2   ;;  %218 = vperm.xlu1 %451, %v194_v2  }
  0x39   : > { %p532_p8 = pneg %p531_p4 }
  0x3b   : > { %p537_p13 = pnand %p536_p12, %p532_p8 }
  0x40   : > { %452 = vset.pattern.permute.xlu0 %v621_v4 }
  0xa1   : > { %v199_v5 = vpop.permute.xlu0 %198  ;;  %v212_v6 = vpop.permute.xlu1 %211 }
  0xa2   : > { %v202_v14 = vmul.f32 %v201_v8, %v199_v5  ;;  %v215_v16 = vmul.f32 %v214_v10, %v212_v6 }
  0xaa   : > { %v205_v12 = vpop.permute.xlu0 %204  ;;  %v219_v13 = vpop.permute.xlu1 %218 }
  0xab   : > { %v208_v15 = vmul.f32 %v207_v9, %v205_v12  ;;  %v222_v18 = vmul.f32 %v221_v11, %v219_v13 }
  0xad   : > { %v209_v17 = vadd.f32 %v208_v15, %v202_v14 }
  0xaf   : > { %v216_v19 = vadd.f32 %v215_v16, %v209_v17 }
  0xb1   : > { %v223_v20 = vadd.f32 %v222_v18, %v216_v19 }
  0xb3   : > { %224 = vst [vmem:[%s193_s12] sm:$0xf] %v223_v20 }
  0xb4   : > { %540 = shalt.err (!%p537_p13)
}
  0xb5   : > { %361 = dma.vmem_to_hbm [thread:$0]  (%p725_p3), %s241_s13, 64, %s243_s6, %s226_s7  }
  0xb6 PF: > { %s834_s28 = sld [smem:[#allocation11_spill]]  ;;  %p378_p0 = scmp.ge.s32.totalorder %s615_s16, 2 }
  0xb8   : > { %p372_p5 = pnand %p378_p0, %p696_p6 }
  0xba   : > { %p373_p7 = pneg %p372_p5 }
  0xbc   : > { %s254_s4 = sand.u32 1, %s834_s28  }
  0xbd   : > { %s255_s1 = scalar_lea.sflag [#allocation4], %s254_s4 }
  0xbe   : > { %582 = dma.done.wait (%p373_p7), %s255_s1, 64  }
  0xbf   : > { %584 = vsyncadd (%p373_p7), %s255_s1, 4294967232  ;;  %s19_s16 = sadd.s32 1, %s615_s16   ;;  %s836_s5 = sld [smem:[#allocation13_spill]] }
  0xc0   : > { %p16_p9 = scmp.ge.s32.totalorder %s19_s16, 6   ;;  %s837_s29 = sld [smem:[#allocation14_spill]] }
  0xc1   : > { %s838_s9 = smov %s591_s10  ;;  %s839_s10 = smov %s595_s11 }
  0xc2   : > { %s840_s11 = smov %s742_s27  ;;  %s841_s12 = smov %s607_s14 }
  0xc3   : > { %s842_s13 = smov %s611_s15  ;;  %18 = sbr.rel (!%p16_p9) target bundleno = 10 (0xa), region = 77 }
  0xc5   : > { %s843_s14 = smov %s836_s5 }
  0xc6   : > { %s844_s15 = smov %s837_s29 }
  0xc8   :  { %261 = vsyncpa [#allocation3], 1 }
  0xc9   :  { %263 = vsyncpa [#allocation3 + $0x1], 1 }
  0xca   :  { %264 = vsyncpa [#allocation6], 1 }
  0xcb   :  { %265 = vsyncpa [#allocation4], 1 }
  0xcc   :  { %267 = vsyncpa [#allocation4 + $0x1], 1 }

</bundles_post_ra>
